<compile_context>
chip_gen: v6e
topology: v6e:2x2x1
jax: 0.10.0
libtpu: 0.0.40
codegen_flags: <defaults>
</compile_context>

<pallas_src>
import math
from functools import partial

import jax
import jax.numpy as jnp
from jax import lax
from jax.experimental import pallas as pl
from jax.experimental.pallas import tpu as pltpu


# ---------------------------------------------------------------------------
# Deterministic stand-ins for the (unprovided) distance-bias sub-modules.
# These dense versions are only used by the pure-JAX reference; the Pallas
# kernel re-synthesizes the same biases in-kernel from per-head scalars.
# ---------------------------------------------------------------------------
def bidirectional_alibi(num_heads, seq_len):
    """Stand-in for littlebird's BidirectionalALiBi.  Returns (H, S, S)."""
    # TODO(synk): BidirectionalALiBi source was not provided; deterministic
    # per-head alpha/beta/gamma re-implementation is used instead.
    h = jnp.arange(1, num_heads + 1, dtype=jnp.float32)
    slope = 2.0 ** (-8.0 * h / num_heads)
    alpha, beta, gamma = 0.5 * slope, slope, 1.5 * slope
    i = jnp.arange(seq_len, dtype=jnp.float32)[:, None]
    j = jnp.arange(seq_len, dtype=jnp.float32)[None, :]
    fwd = j - i
    dist = jnp.where(fwd >= 0,
                     beta[:, None, None] * fwd[None],
                     gamma[:, None, None] * (-fwd)[None])
    is_global = (i == 0) | (j == 0)
    return jnp.where(is_global[None], alpha[:, None, None] * jnp.ones_like(dist),
                     dist).astype(jnp.float32)


def uniform_distance_matrix(num_heads, block_size, seq_len, pack_len):
    """Stand-in for littlebird's UniformDistanceMatrix.  Returns (H, P, S)."""
    # TODO(synk): UniformDistanceMatrix source was not provided; per-head
    # uniform (constant) distance is used instead.
    h = jnp.arange(1, num_heads + 1, dtype=jnp.float32)
    theta = 2.0 ** (-8.0 * h / num_heads)
    const = jnp.float32(block_size) / 2.0
    return theta[:, None, None] * const * jnp.ones(
        (num_heads, pack_len, seq_len), jnp.float32)


# ---------------------------------------------------------------------------
# Fused linear projection kernel (y = x @ W^T + b)
# ---------------------------------------------------------------------------
def _linear_kernel(x_ref, wt_ref, b_ref, o_ref):
    o_ref[...] = (jnp.dot(x_ref[...], wt_ref[...],
                          preferred_element_type=jnp.float32)
                  + b_ref[...]).astype(o_ref.dtype)


def pallas_linear(x, weight, bias):
    """x: (..., K); weight: (N, K); bias: (N,).  Returns (..., N) float32."""
    orig_shape = x.shape
    K = orig_shape[-1]
    N = weight.shape[0]
    x2d = x.reshape(-1, K)
    M = x2d.shape[0]
    # Largest row tile (multiple of 8) dividing M, capped at 1024 rows.
    tm = M
    for cand in (1024, 512, 256, 128, 64, 32, 16, 8):
        if M % cand == 0:
            tm = cand
            break
    wt = weight.T                    # parameter-setup glue
    b2d = bias.reshape(1, N)
    out = pl.pallas_call(
        _linear_kernel,
        out_shape=jax.ShapeDtypeStruct((M, N), jnp.float32),
        grid=(M // tm,),
        in_specs=[pl.BlockSpec((tm, K), lambda i: (i, 0)),
                  pl.BlockSpec((K, N), lambda i: (0, 0)),
                  pl.BlockSpec((1, N), lambda i: (0, 0))],
        out_specs=pl.BlockSpec((tm, N), lambda i: (i, 0)),
        compiler_params=pltpu.CompilerParams(
            dimension_semantics=("parallel",)),
    )(x2d, wt, b2d)
    return out.reshape(orig_shape[:-1] + (N,))


# ---------------------------------------------------------------------------
# Sliding-window + packed attention kernel: one (head, batch) pair per step.
# ---------------------------------------------------------------------------
def _uswa_kernel(hp_ref, q_ref, kx_ref, vx_ref, kcp_ref, vcp_ref,
                 mv_ref, mvg_ref, tband_ref, out_ref,
                 *, block_size, n_mid, seq_len, rsqrt_d):
    B = block_size
    S = seq_len
    PEN = -10000.0
    PEN_MID = PEN * rsqrt_d  # torch adds middle-band penalties before *rsqrt_d
    f32 = jnp.float32

    # per-head bias scalars as (1,1) tiles (pure VPU broadcasts)
    alpha = hp_ref[0, :, 0:1]
    beta = hp_ref[0, :, 1:2]
    gamma = hp_ref[0, :, 2:3]
    dp_c = hp_ref[0, :, 3:4]

    mv = mv_ref[0]                                    # (S, 1) query mask

    def qkT(a, b):  # (m,d) x (n,d) -> (m,n), f32 accumulation on the MXU
        return lax.dot_general(a, b, (((1,), (1,)), ((), ())),
                               preferred_element_type=jnp.float32)

    def pv(p, v):   # probs @ values, bf16 MXU inputs, f32 accumulation
        return jnp.dot(p.astype(v.dtype), v, preferred_element_type=jnp.float32)

    def softmax(x):
        x = x - jnp.max(x, axis=-1, keepdims=True)
        e = jnp.exp(x)
        return e * pl.reciprocal(jnp.sum(e, axis=-1, keepdims=True), approx=True)

    def rows(n, start):
        return start + lax.broadcasted_iota(jnp.int32, (n, 1), 0)

    def cols(n, start):
        return start + lax.broadcasted_iota(jnp.int32, (1, n), 1)

    def alibi(qrow, kcol):
        # D[h, q, k] of the permuted BidirectionalALiBi stand-in, in-kernel.
        fwd = (qrow - kcol).astype(f32)
        dist = jnp.where(fwd >= 0.0, beta * fwd, gamma * (-fwd))
        return jnp.where((qrow == 0) | (kcol == 0), alpha, dist)

    # ---- packed / compressed-memory attention over Cp (all S rows at once) --
    sc_p = qkT(q_ref[0, 0], kcp_ref[0, 0]) - dp_c + (1.0 - mv) * PEN
    packed = pv(softmax(sc_p), vcp_ref[0, 0]) * mv            # (S, hs)
    out_ref[0, 0] = packed.astype(out_ref.dtype)

    # ---- first two row-blocks attend to the first four key blocks ----------
    sc_f = qkT(q_ref[0, 0, 0:2 * B, :], kx_ref[0, 0, 0:4 * B, :])
    sc_f = sc_f - alibi(rows(2 * B, 0), cols(4 * B, 0)) + (1.0 - mv[0:2 * B]) * PEN
    ctx_f = pv(softmax(sc_f), vx_ref[0, 0, 0:4 * B, :])
    out_ref[0, 0, 0:2 * B, :] = (out_ref[0, 0, 0:2 * B, :]
                                 + ctx_f.astype(out_ref.dtype))

    # ---- middle band: fused [global block 0 | 3-block sliding window] ------
    def mid_body(l, carry):
        r0 = pl.multiple_of((l + 2) * B, B)           # query rows of this block
        w0 = pl.multiple_of((l + 1) * B, B)           # first key row of window
        q_blk = q_ref[0, 0, pl.ds(r0, B), :]                              # (B, hs)
        k_cat = jnp.concatenate([kx_ref[0, 0, 0:B, :],
                                 kx_ref[0, 0, pl.ds(w0, 3 * B), :]], axis=0)
        v_cat = jnp.concatenate([vx_ref[0, 0, 0:B, :],
                                 vx_ref[0, 0, pl.ds(w0, 3 * B), :]], axis=0)
        sc = qkT(q_blk, k_cat)                                            # (B, 4B)

        # masks generated in-kernel (penalties scaled: torch adds them before
        # multiplying the middle-band scores by rsqrt_d)
        fq = mv_ref[0, pl.ds(r0, B), :]                                   # (B, 1)
        gq = mvg_ref[0, pl.ds(r0, B), :]          # (B, 1) faithful buggy broadcast
        tk = tband_ref[l, 0, :, :]                                        # (1, 3B)
        pen_tile = jnp.concatenate(
            [jnp.broadcast_to((1.0 - gq) * PEN_MID, (B, B)),
             (1.0 - fq * tk) * PEN_MID], axis=-1)                         # (B, 4B)

        # ALiBi bias: torch's get_middle_band_distances indexes D rows at
        # (absolute_row - 2B) -> rows l*B..(l+1)*B; cols [0,B) ++ [(l+1)B,(l+4)B)
        c = lax.broadcasted_iota(jnp.int32, (1, 4 * B), 1)
        kcol = jnp.where(c < B, c, c + l * B)
        bias = alibi(rows(B, l * B), kcol)

        ctx = pv(softmax(sc + pen_tile - bias), v_cat)
        out_ref[0, 0, pl.ds(r0, B), :] = (out_ref[0, 0, pl.ds(r0, B), :]
                                          + ctx.astype(out_ref.dtype))
        return carry

    lax.fori_loop(0, n_mid, mid_body, 0)

    # ---- last row-block: keys [block 0 | last 3 blocks]; bias columns are
    #      D[-B:, -4B:] (do not match the keys) — faithful to the torch code --
    k_l = jnp.concatenate([kx_ref[0, 0, 0:B, :],
                           kx_ref[0, 0, S - 3 * B:S, :]], axis=0)
    v_l = jnp.concatenate([vx_ref[0, 0, 0:B, :],
                           vx_ref[0, 0, S - 3 * B:S, :]], axis=0)
    sc_l = qkT(q_ref[0, 0, S - B:S, :], k_l)
    sc_l = sc_l - alibi(rows(B, S - B), cols(4 * B, S - 4 * B))
    ctx_l = pv(softmax(sc_l), v_l)
    out_ref[0, 0, S - B:S, :] = (out_ref[0, 0, S - B:S, :]
                                 + ctx_l.astype(out_ref.dtype))


# ---------------------------------------------------------------------------
# Forward pass (projections, mask prep, head split, pallas_call)
# ---------------------------------------------------------------------------
def unpack_sliding_window_attention(X, Cp, attention_mask, params,
                                    num_heads, block_size):
    batch, seq_len, dim = X.shape
    pack_len = Cp.shape[1]
    hs = dim // num_heads
    B = block_size
    nb = seq_len // B
    n_mid = nb - 3
    rsqrt_d = 1.0 / math.sqrt(hs)
    assert seq_len % B == 0 and nb >= 4 and dim % num_heads == 0

    # ---- fused QKV projection: X read once, lane-dense (3*dim) output ------
    Wqkv = jnp.concatenate([params['Wq'], params['Wk'], params['Wv']], axis=0)
    bqkv = jnp.concatenate([params['bq'], params['bk'], params['bv']], axis=0)
    q_x, k_x, v_x = jnp.split(pallas_linear(X, Wqkv, bqkv), 3, axis=-1)
    Wkv = jnp.concatenate([params['Wk'], params['Wv']], axis=0)
    bkv = jnp.concatenate([params['bk'], params['bv']], axis=0)
    k_cp, v_cp = jnp.split(pallas_linear(Cp, Wkv, bkv), 2, axis=-1)

    def heads(y):
        b, s, _ = y.shape
        return jnp.transpose(y.reshape(b, s, num_heads, hs), (0, 2, 1, 3))

    # bf16 MXU inputs (f32 accumulation inside the kernel); rsqrt_d folded in.
    query = (heads(q_x) * rsqrt_d).astype(jnp.bfloat16)
    key_x = heads(k_x).astype(jnp.bfloat16)
    val_x = heads(v_x).astype(jnp.bfloat16)
    key_cp = heads(k_cp).astype(jnp.bfloat16)
    val_cp = heads(v_cp).astype(jnp.bfloat16)

    # per-head bias scalars: [alpha, beta, gamma, theta*B/2]; the kernel
    # synthesizes the needed D / Dp slices from these (no O(S^2) arrays).
    hidx = jnp.arange(1, num_heads + 1, dtype=jnp.float32)
    slope = 2.0 ** (-8.0 * hidx / num_heads)
    head_params = jnp.stack(
        [0.5 * slope, slope, 1.5 * slope, slope * (block_size / 2.0)],
        axis=-1).reshape(num_heads, 1, 4).astype(jnp.float32)

    # masks: only O(S) of mask data goes into the kernel.
    am = attention_mask.astype(jnp.float32)
    mask_v = am.reshape(batch, seq_len, 1)
    mask_block = am.reshape(batch, nb, B)
    to_band = jnp.concatenate([mask_block[:, 1:-2], mask_block[:, 2:-1],
                               mask_block[:, 3:]], axis=2)      # (batch, n_mid, 3B)
    to_band = jnp.transpose(to_band, (1, 0, 2)).reshape(n_mid, batch, 1, 3 * B)

    # Faithful reproduction of the torch broadcast in `middle_band_global`:
    # mask_block's batch axis right-aligns with the attention *heads* axis.
    if batch == 1:
        mvg_map = lambda h, b: (0, 0, 0)
    elif batch == num_heads:
        mvg_map = lambda h, b: (h, 0, 0)
    else:
        raise ValueError("middle_band_global broadcast (as in the PyTorch code) "
                         "requires batch == 1 or batch == num_heads")

    kernel = partial(_uswa_kernel, block_size=B, n_mid=n_mid,
                     seq_len=seq_len, rsqrt_d=rsqrt_d)
    out = pl.pallas_call(
        kernel,
        out_shape=jax.ShapeDtypeStruct((batch, num_heads, seq_len, hs),
                                       jnp.float32),
        grid=(num_heads, batch),         # heads first: megacore split at batch=1
        in_specs=[
            pl.BlockSpec((1, 1, 4), lambda h, b: (h, 0, 0)),                 # head scalars
            pl.BlockSpec((1, 1, seq_len, hs), lambda h, b: (b, h, 0, 0)),    # q (pre-scaled)
            pl.BlockSpec((1, 1, seq_len, hs), lambda h, b: (b, h, 0, 0)),    # k_x
            pl.BlockSpec((1, 1, seq_len, hs), lambda h, b: (b, h, 0, 0)),    # v_x
            pl.BlockSpec((1, 1, pack_len, hs), lambda h, b: (b, h, 0, 0)),   # k_cp
            pl.BlockSpec((1, 1, pack_len, hs), lambda h, b: (b, h, 0, 0)),   # v_cp
            pl.BlockSpec((1, seq_len, 1), lambda h, b: (b, 0, 0)),           # mask_v
            pl.BlockSpec((1, seq_len, 1), mvg_map),                          # mask_v (buggy bcast)
            pl.BlockSpec((n_mid, 1, 1, 3 * B), lambda h, b: (0, b, 0, 0)),   # window key mask
        ],
        out_specs=pl.BlockSpec((1, 1, seq_len, hs), lambda h, b: (b, h, 0, 0)),
        compiler_params=pltpu.CompilerParams(
            dimension_semantics=("parallel", "parallel")),
    )(head_params, query, key_x, val_x, key_cp, val_cp, mask_v, mask_v, to_band)

    # torch `.view(batch, seq, H*hs)` on contiguous (batch, H, seq, hs) is a
    # row-major reshape (NO head transpose) — faithful to the module.
    return out.reshape(batch, seq_len, num_heads * hs) * mask_v


# ---------------------------------------------------------------------------
# Pure-JAX reference (mirrors the PyTorch forward structure) for validation
# ---------------------------------------------------------------------------
def reference_forward(X, Cp, attention_mask, params, num_heads, block_size):
    prec = jax.lax.Precision.HIGHEST
    batch, S, dim = X.shape
    P = Cp.shape[1]
    hs = dim // num_heads
    B = block_size
    nb = S // B
    n_mid = nb - 3
    r = 1.0 / math.sqrt(hs)
    pen = -10000.0

    def lin(x, w, b):
        return jnp.einsum('bsk,nk->bsn', x, w, precision=prec) + b

    def heads(y):
        return jnp.transpose(y.reshape(batch, -1, num_heads, hs), (0, 2, 1, 3))

    D = jnp.transpose(bidirectional_alibi(num_heads, S), (0, 2, 1))
    Dp = jnp.transpose(uniform_distance_matrix(num_heads, B, S, P), (0, 2, 1))

    mask_block = attention_mask.reshape(batch, nb, B)
    exp_to = jnp.concatenate([mask_block[:, 1:-2], mask_block[:, 2:-1],
                              mask_block[:, 3:]], axis=2)
    band_mask = jnp.einsum('blq,blk->blqk', mask_block[:, 2:-1], exp_to)[:, None]
    mask_v = attention_mask.reshape(batch, 1, S, 1)

    q = heads(lin(X, params['Wq'], params['bq']))
    kx = heads(lin(X, params['Wk'], params['bk']))
    vx = heads(lin(X, params['Wv'], params['bv']))
    kcp = heads(lin(Cp, params['Wk'], params['bk']))
    vcp = heads(lin(Cp, params['Wv'], params['bv']))

    a = jnp.einsum('bhqd,bhkd->bhqk', q, kcp, precision=prec) * r - Dp
    a = a + (1.0 - mask_v) * pen
    packed = jnp.einsum('bhqk,bhkd->bhqd', jax.nn.softmax(a, axis=-1), vcp,
                        precision=prec) * mask_v

    qb = q.reshape(batch, num_heads, nb, B, hs)
    kb = kx.reshape(batch, num_heads, nb, B, hs)
    vb = vx.reshape(batch, num_heads, nb, B, hs)

    ftr = jnp.einsum('bhqd,bhkd->bhqk', q[:, :, :2 * B], kx[:, :, :4 * B],
                     precision=prec) * r
    ftr = ftr - D[:, :2 * B, :4 * B] + (1.0 - mask_v[:, :, :2 * B, :]) * pen
    ftr_ctx = jnp.einsum('bhqk,bhkd->bhqd', jax.nn.softmax(ftr, axis=-1),
                         vx[:, :, :4 * B], precision=prec)
    ftr_ctx = ftr_ctx.reshape(batch, num_heads, 2, B, hs)

    k_mid = jnp.concatenate([kb[:, :, 1:-2], kb[:, :, 2:-1], kb[:, :, 3:]], axis=3)
    v_mid = jnp.concatenate([vb[:, :, 1:-2], vb[:, :, 2:-1], vb[:, :, 3:]], axis=3)
    sliding = jnp.einsum('bhlqd,bhlkd->bhlqk', qb[:, :, 2:-1], k_mid, precision=prec)
    sliding = sliding + (1.0 - band_mask) * pen
    glob = jnp.einsum('bhlqd,bhkd->bhlqk', qb[:, :, 2:-1], kb[:, :, 0], precision=prec)
    glob = glob + (1.0 - mask_block[:, 2:-1][..., None]) * pen
    attn = jnp.concatenate([glob, sliding], axis=-1) * r
    # torch's get_middle_band_distances indexes D rows at (absolute_row - 2B):
    Dmid = jnp.stack([jnp.concatenate(
        [D[:, l * B:(l + 1) * B, :B],
         D[:, l * B:(l + 1) * B, (l + 1) * B:(l + 4) * B]], axis=-1)
        for l in range(n_mid)], axis=1)
    attn = jax.nn.softmax(attn - Dmid, axis=-1)
    mid_ctx = jnp.einsum('bhlqk,bhkd->bhlqd', attn[..., :B], vb[:, :, 0],
                         precision=prec)
    mid_ctx = mid_ctx + jnp.einsum('bhlqk,bhlkd->bhlqd', attn[..., B:4 * B],
                                   v_mid, precision=prec)

    lr_k = jnp.concatenate([kb[:, :, 0], kb[:, :, -3], kb[:, :, -2], kb[:, :, -1]],
                           axis=2)
    lr_v = jnp.concatenate([vb[:, :, 0], vb[:, :, -3], vb[:, :, -2], vb[:, :, -1]],
                           axis=2)
    lr = jnp.einsum('bhqd,bhkd->bhqk', qb[:, :, -1], lr_k, precision=prec) * r
    lr = lr - D[:, -B:, -4 * B:]
    lr_ctx = jnp.einsum('bhqk,bhkd->bhqd', jax.nn.softmax(lr, axis=-1), lr_v,
                        precision=prec)[:, :, None]

    context = jnp.concatenate([ftr_ctx, mid_ctx, lr_ctx], axis=2)
    context = context.reshape(batch, num_heads, S, hs)
    Cx = (context + packed).reshape(batch, S, num_heads * hs)
    return Cx * attention_mask.reshape(batch, S, 1)


def init_params(key, dim):
    ks = jax.random.split(key, 6)
    s = 1.0 / math.sqrt(dim)
    return {
        'Wq': s * jax.random.normal(ks[0], (dim, dim), jnp.float32),
        'bq': s * jax.random.normal(ks[1], (dim,), jnp.float32),
        'Wk': s * jax.random.normal(ks[2], (dim, dim), jnp.float32),
        'bk': s * jax.random.normal(ks[3], (dim,), jnp.float32),
        'Wv': s * jax.random.normal(ks[4], (dim, dim), jnp.float32),
        'bv': s * jax.random.normal(ks[5], (dim,), jnp.float32),
    }


if __name__ == "__main__":
    # small but TPU-aligned shapes: 8 blocks of 32 -> seq_len 256
    batch, seq_len, dim = 1, 256, 64            # batch=1 required by the original
    num_heads, block_size, pack_len = 4, 32, 64  # module's mask_block broadcast

    root = jax.random.PRNGKey(0)
    kp, kxr, kcr = jax.random.split(root, 3)
    params = init_params(kp, dim)
    X = jax.random.normal(kxr, (batch, seq_len, dim), jnp.float32)
    Cp = jax.random.normal(kcr, (batch, pack_len, dim), jnp.float32)
    attention_mask = (jnp.arange(seq_len) < seq_len - 40).astype(jnp.float32)
    attention_mask = jnp.broadcast_to(attention_mask, (batch, seq_len))

    out = unpack_sliding_window_attention(X, Cp, attention_mask, params,
                                          num_heads, block_size)
    out = jax.block_until_ready(out)

    ref = reference_forward(X, Cp, attention_mask, params, num_heads, block_size)
    assert out.shape == (batch, seq_len, dim)
    assert bool(jnp.all(jnp.isfinite(out)))
    max_err = float(jnp.max(jnp.abs(out - ref)))
    # bf16 MXU inputs (f32 accumulation) introduce ~1e-2-level differences vs
    # the all-f32 reference; 5e-2 comfortably bounds them at these shapes.
    assert max_err < 5e-2, max_err
    print("KERNEL_OK")
</pallas_src>

<mosaic_0001>
module attributes {stable_mosaic.version = 11 : i64} {
  func.func @_linear_kernel(%arg0: i32, %arg1: memref<256x64xf32, #tpu.memory_space<vmem>>, %arg2: memref<64x192xf32, #tpu.memory_space<vmem>>, %arg3: memref<1x192xf32, #tpu.memory_space<vmem>>, %arg4: memref<256x192xf32, #tpu.memory_space<vmem>>) attributes {dimension_semantics = [#tpu.dimension_semantics<parallel>], iteration_bounds = array<i64: 1>, scalar_prefetch = 0 : i64, scratch_operands = 0 : i64, tpu.core_type = #tpu.core_type<tc>, window_params = [{transform_indices = @transform_0, window_bounds = array<i64: 256, 64>}, {pipeline_mode = #tpu.pipeline_mode<synchronous>, transform_indices = @transform_1, window_bounds = array<i64: 64, 192>}, {pipeline_mode = #tpu.pipeline_mode<synchronous>, transform_indices = @transform_2, window_bounds = array<i64: 1, 192>}, {transform_indices = @transform_3, window_bounds = array<i64: 256, 192>}]} {
    %c0 = arith.constant 0 : index
    %c0_0 = arith.constant 0 : index
    %0 = vector.load %arg1[%c0, %c0_0] : memref<256x64xf32, #tpu.memory_space<vmem>>, vector<256x64xf32>
    %c0_1 = arith.constant 0 : index
    %c0_2 = arith.constant 0 : index
    %1 = vector.load %arg2[%c0_1, %c0_2] : memref<64x192xf32, #tpu.memory_space<vmem>>, vector<64x192xf32>
    %cst = arith.constant dense<0.000000e+00> : vector<256x192xf32>
    %2 = tpu.matmul %0, %1, %cst {dimension_numbers = #tpu.dot_dimension_numbers<[1], [0], [0], [1], [0, 0, 1, 1], [], []>} : vector<256x64xf32>, vector<64x192xf32>, vector<256x192xf32> -> vector<256x192xf32>
    %c0_3 = arith.constant 0 : index
    %c0_4 = arith.constant 0 : index
    %3 = vector.load %arg3[%c0_3, %c0_4] : memref<1x192xf32, #tpu.memory_space<vmem>>, vector<1x192xf32>
    %4 = vector.broadcast %3 : vector<1x192xf32> to vector<256x192xf32>
    %5 = arith.addf %2, %4 : vector<256x192xf32>
    %c0_5 = arith.constant 0 : index
    %c0_6 = arith.constant 0 : index
    %6 = vector.load %arg4[%c0_5, %c0_6] : memref<256x192xf32, #tpu.memory_space<vmem>>, vector<256x192xf32>
    tpu.vector_store %arg4[%c0_5, %c0_6], %5 {strides = array<i32>} : memref<256x192xf32, #tpu.memory_space<vmem>>, vector<256x192xf32>,
    return
  }
  func.func @transform_0(%arg0: i32) -> (i32, i32) {
    %c0_i32 = arith.constant 0 : i32
    %c0_i32_0 = arith.constant 0 : i32
    return %arg0, %c0_i32 : i32, i32
  }
  func.func @transform_1(%arg0: i32) -> (i32, i32) {
    %c0_i32 = arith.constant 0 : i32
    %c0_i32_0 = arith.constant 0 : i32
    %c0_i32_1 = arith.constant 0 : i32
    return %c0_i32, %c0_i32_0 : i32, i32
  }
  func.func @transform_2(%arg0: i32) -> (i32, i32) {
    %c0_i32 = arith.constant 0 : i32
    %c0_i32_0 = arith.constant 0 : i32
    %c0_i32_1 = arith.constant 0 : i32
    return %c0_i32, %c0_i32_0 : i32, i32
  }
  func.func @transform_3(%arg0: i32) -> (i32, i32) {
    %c0_i32 = arith.constant 0 : i32
    %c0_i32_0 = arith.constant 0 : i32
    return %arg0, %c0_i32 : i32, i32
  }
}

</mosaic_0001>

<bundles_post_ra>
// kernel: tpu_custom_call.1
= control target key start
LH: loop header
LB: loop body
LE: loop exit
PB: predicated region body
PF: predicated region fallthrough
CT: control target
= control target key end

     0   :  { %v545_v3 = vmov 0.0   ;;  %vm74_vm0 = vcmask 523264   ;;  %v64_v49 = vlaneseq  ;;  %s1069_s1 = inlined_call_operand.vmem [shape: f32[64,192], index: 1, kind: input, shape index: {}]   ;;  %s1070_s0 = inlined_call_operand.vmem [shape: f32[256,64], index: 0, kind: input, shape index: {}]   ;;  %s1071_s2 = inlined_call_operand.vmem [shape: f32[1,192], index: 2, kind: input, shape index: {}]   ;;  %s1072_s3 = inlined_call_operand.vmem [shape: f32[256,192], index: 3, kind: output, shape index: {}]  }
   0x1   :  { %v61_v0 = vld [vmem:[%s1069_s1 + $0x78] sm:$0xff]  ;;  %v60_v1 = vld [vmem:[%s1069_s1 + $0x70] sm:$0xff]  ;;  %v59_v2 = vld [vmem:[%s1069_s1 + $0x68] sm:$0xff]  ;;  %235 = vmatprep.mubr.f32.mxu0 %v545_v3  ;;  %331 = vmatprep.mubr.f32.mxu1 %v545_v3 }
   0x2   :  { %187 = vmatprep.subr.mxu0 %v61_v0  ;;  %528 = vmatprep.subr.mxu1 %v61_v0  ;;  %v58_v4 = vld [vmem:[%s1069_s1 + $0x60] sm:$0xff]  ;;  %v57_v5 = vld [vmem:[%s1069_s1 + $0x58] sm:$0xff]  ;;  %v56_v6 = vld [vmem:[%s1069_s1 + $0x50] sm:$0xff]  ;;  %v65_v50 = vshrl.u32 %v64_v49, 7 }
   0x3   :  { %188 = vmatpush1.msra.mxu0 %v60_v1  ;;  %536 = vmatpush1.msra.mxu1 %v60_v1  ;;  %v55_v7 = vld [vmem:[%s1069_s1 + $0x48] sm:$0xff]  ;;  %v54_v8 = vld [vmem:[%s1069_s1 + $0x40] sm:$0xff]  ;;  %v53_v9 = vld [vmem:[%s1069_s1 + $0x38] sm:$0xff] }
   0x4   :  { %189 = vmatprep.subr.mxu0 %v59_v2  ;;  %529 = vmatprep.subr.mxu1 %v59_v2  ;;  %v52_v10 = vld [vmem:[%s1069_s1 + $0x30] sm:$0xff]  ;;  %v51_v11 = vld [vmem:[%s1069_s1 + $0x28] sm:$0xff]  ;;  %v50_v12 = vld [vmem:[%s1069_s1 + $0x20] sm:$0xff]  ;;  %v66_v51 = vsub.s32 0, %v65_v50  ;;  %v70_v53 = vsub.s32 1, %v65_v50 }
   0x5   :  { %190 = vmatpush1.msra.mxu0 %v58_v4  ;;  %537 = vmatpush1.msra.mxu1 %v58_v4  ;;  %v49_v13 = vld [vmem:[%s1069_s1 + $0x18] sm:$0xff]  ;;  %v48_v14 = vld [vmem:[%s1069_s1 + $0x10] sm:$0xff]  ;;  %v47_v15 = vld [vmem:[%s1069_s1 + $0x8] sm:$0xff] }
   0x6   :  { %191 = vmatprep.subr.mxu0 %v57_v5  ;;  %530 = vmatprep.subr.mxu1 %v57_v5  ;;  %v46_v16 = vld [vmem:[%s1069_s1] sm:$0xff]  ;;  %v15_v19 = vld [vmem:[%s1070_s0 + $0x8] sm:$0xff]  ;;  %v16_v21 = vld [vmem:[%s1070_s0 + $0x10] sm:$0xff] }
   0x7   :  { %192 = vmatpush1.msra.mxu0 %v56_v6  ;;  %538 = vmatpush1.msra.mxu1 %v56_v6  ;;  %v14_v17 = vld [vmem:[%s1070_s0] sm:$0xff]  ;;  %v31_v20 = vld [vmem:[%s1070_s0 + $0x88] sm:$0xff]  ;;  %v32_v22 = vld [vmem:[%s1070_s0 + $0x90] sm:$0xff] }
   0x8   :  { %193 = vmatprep.subr.mxu0 %v55_v7  ;;  %531 = vmatprep.subr.mxu1 %v55_v7  ;;  %v30_v18 = vld [vmem:[%s1070_s0 + $0x80] sm:$0xff]  ;;  %v17_v23 = vld [vmem:[%s1070_s0 + $0x18] sm:$0xff]  ;;  %v19_v27 = vld [vmem:[%s1070_s0 + $0x28] sm:$0xff] }
   0x9   :  { %194 = vmatpush1.msra.mxu0 %v54_v8  ;;  %539 = vmatpush1.msra.mxu1 %v54_v8  ;;  %v33_v24 = vld [vmem:[%s1070_s0 + $0x98] sm:$0xff]  ;;  %v18_v25 = vld [vmem:[%s1070_s0 + $0x20] sm:$0xff]  ;;  %v35_v28 = vld [vmem:[%s1070_s0 + $0xa8] sm:$0xff] }
   0xa   :  { %195 = vmatprep.subr.mxu0 %v53_v9  ;;  %532 = vmatprep.subr.mxu1 %v53_v9  ;;  %v34_v26 = vld [vmem:[%s1070_s0 + $0xa0] sm:$0xff]  ;;  %v20_v29 = vld [vmem:[%s1070_s0 + $0x30] sm:$0xff]  ;;  %v21_v31 = vld [vmem:[%s1070_s0 + $0x38] sm:$0xff] }
   0xb   :  { %196 = vmatpush1.msra.mxu0 %v52_v10  ;;  %540 = vmatpush1.msra.mxu1 %v52_v10  ;;  %v36_v30 = vld [vmem:[%s1070_s0 + $0xb0] sm:$0xff]  ;;  %v37_v32 = vld [vmem:[%s1070_s0 + $0xb8] sm:$0xff]  ;;  %v22_v33 = vld [vmem:[%s1070_s0 + $0x40] sm:$0xff] }
   0xc   :  { %197 = vmatprep.subr.mxu0 %v51_v11  ;;  %533 = vmatprep.subr.mxu1 %v51_v11  ;;  %v38_v34 = vld [vmem:[%s1070_s0 + $0xc0] sm:$0xff]  ;;  %v23_v35 = vld [vmem:[%s1070_s0 + $0x48] sm:$0xff]  ;;  %v24_v37 = vld [vmem:[%s1070_s0 + $0x50] sm:$0xff] }
   0xd   :  { %198 = vmatpush1.msra.mxu0 %v50_v12  ;;  %541 = vmatpush1.msra.mxu1 %v50_v12  ;;  %v39_v36 = vld [vmem:[%s1070_s0 + $0xc8] sm:$0xff]  ;;  %v40_v38 = vld [vmem:[%s1070_s0 + $0xd0] sm:$0xff]  ;;  %v25_v39 = vld [vmem:[%s1070_s0 + $0x58] sm:$0xff] }
   0xe   :  { %199 = vmatprep.subr.mxu0 %v49_v13  ;;  %534 = vmatprep.subr.mxu1 %v49_v13  ;;  %v41_v40 = vld [vmem:[%s1070_s0 + $0xd8] sm:$0xff]  ;;  %v26_v41 = vld [vmem:[%s1070_s0 + $0x60] sm:$0xff]  ;;  %v27_v43 = vld [vmem:[%s1070_s0 + $0x68] sm:$0xff] }
   0xf   :  { %200 = vmatpush1.msra.mxu0 %v48_v14  ;;  %542 = vmatpush1.msra.mxu1 %v48_v14  ;;  %v42_v42 = vld [vmem:[%s1070_s0 + $0xe0] sm:$0xff]  ;;  %v43_v44 = vld [vmem:[%s1070_s0 + $0xe8] sm:$0xff]  ;;  %v28_v45 = vld [vmem:[%s1070_s0 + $0x70] sm:$0xff] }
  0x10   :  { %201 = vmatprep.subr.mxu0 %v47_v15  ;;  %535 = vmatprep.subr.mxu1 %v47_v15  ;;  %v44_v46 = vld [vmem:[%s1070_s0 + $0xf0] sm:$0xff]  ;;  %v29_v47 = vld [vmem:[%s1070_s0 + $0x78] sm:$0xff]  ;;  %v62_v52 = vld [vmem:[%s1071_s2] sm:$0x3] }
  0x11   :  { %202 = vmatpush1.msra.mxu0 %v46_v16  ;;  %543 = vmatpush1.msra.mxu1 %v46_v16  ;;  %v45_v48 = vld [vmem:[%s1070_s0 + $0xf8] sm:$0xff]  ;;  %v777_v54 = vrot.slane %v62_v52, %v66_v51  ;;  %v779_v55 = vrot.slane %v62_v52, %v70_v53 }
  0x12   :  { %496 = vmatmul.mubr.msk.f32.vlgmr.msra.gmra.mxu0 %vm74_vm0, %v14_v17  ;;  %512 = vmatmul.mubr.msk.f32.vlgmr.msra.gmra.mxu1 %vm74_vm0, %v30_v18 }
  0x13   :  { %241 = vmatprep.mubr.f32.mxu0 %v545_v3  ;;  %337 = vmatprep.mubr.f32.mxu1 %v545_v3 }
  0x16   :  { %497 = vmatmul.mubr.msk.f32.gmra.mxu0 %vm74_vm0, %v15_v19  ;;  %513 = vmatmul.mubr.msk.f32.gmra.mxu1 %vm74_vm0, %v31_v20 }
  0x17   :  { %247 = vmatprep.mubr.f32.mxu0 %v545_v3  ;;  %343 = vmatprep.mubr.f32.mxu1 %v545_v3 }
  0x1a   :  { %498 = vmatmul.mubr.msk.f32.gmra.mxu0 %vm74_vm0, %v16_v21  ;;  %514 = vmatmul.mubr.msk.f32.gmra.mxu1 %vm74_vm0, %v32_v22 }
  0x1b   :  { %253 = vmatprep.mubr.f32.mxu0 %v545_v3  ;;  %349 = vmatprep.mubr.f32.mxu1 %v545_v3 }
  0x1e   :  { %499 = vmatmul.mubr.msk.f32.gmra.mxu0 %vm74_vm0, %v17_v23  ;;  %515 = vmatmul.mubr.msk.f32.gmra.mxu1 %vm74_vm0, %v33_v24 }
  0x1f   :  { %259 = vmatprep.mubr.f32.mxu0 %v545_v3  ;;  %355 = vmatprep.mubr.f32.mxu1 %v545_v3 }
  0x22   :  { %500 = vmatmul.mubr.msk.f32.gmra.mxu0 %vm74_vm0, %v18_v25  ;;  %516 = vmatmul.mubr.msk.f32.gmra.mxu1 %vm74_vm0, %v34_v26 }
  0x23   :  { %265 = vmatprep.mubr.f32.mxu0 %v545_v3  ;;  %361 = vmatprep.mubr.f32.mxu1 %v545_v3 }
  0x26   :  { %501 = vmatmul.mubr.msk.f32.gmra.mxu0 %vm74_vm0, %v19_v27  ;;  %517 = vmatmul.mubr.msk.f32.gmra.mxu1 %vm74_vm0, %v35_v28 }
  0x27   :  { %271 = vmatprep.mubr.f32.mxu0 %v545_v3  ;;  %367 = vmatprep.mubr.f32.mxu1 %v545_v3 }
  0x2a   :  { %502 = vmatmul.mubr.msk.f32.gmra.mxu0 %vm74_vm0, %v20_v29  ;;  %518 = vmatmul.mubr.msk.f32.gmra.mxu1 %vm74_vm0, %v36_v30 }
  0x2b   :  { %277 = vmatprep.mubr.f32.mxu0 %v545_v3  ;;  %373 = vmatprep.mubr.f32.mxu1 %v545_v3 }
  0x2e   :  { %503 = vmatmul.mubr.msk.f32.gmra.mxu0 %vm74_vm0, %v21_v31  ;;  %519 = vmatmul.mubr.msk.f32.gmra.mxu1 %vm74_vm0, %v37_v32 }
  0x2f   :  { %283 = vmatprep.mubr.f32.mxu0 %v545_v3  ;;  %379 = vmatprep.mubr.f32.mxu1 %v545_v3 }
  0x32   :  { %504 = vmatmul.mubr.msk.f32.gmra.mxu0 %vm74_vm0, %v22_v33  ;;  %520 = vmatmul.mubr.msk.f32.gmra.mxu1 %vm74_vm0, %v38_v34 }
  0x33   :  { %289 = vmatprep.mubr.f32.mxu0 %v545_v3  ;;  %385 = vmatprep.mubr.f32.mxu1 %v545_v3 }
  0x36   :  { %505 = vmatmul.mubr.msk.f32.gmra.mxu0 %vm74_vm0, %v23_v35  ;;  %521 = vmatmul.mubr.msk.f32.gmra.mxu1 %vm74_vm0, %v39_v36 }
  0x37   :  { %295 = vmatprep.mubr.f32.mxu0 %v545_v3  ;;  %391 = vmatprep.mubr.f32.mxu1 %v545_v3 }
  0x3a   :  { %506 = vmatmul.mubr.msk.f32.gmra.mxu0 %vm74_vm0, %v24_v37  ;;  %522 = vmatmul.mubr.msk.f32.gmra.mxu1 %vm74_vm0, %v40_v38 }
  0x3b   :  { %301 = vmatprep.mubr.f32.mxu0 %v545_v3  ;;  %397 = vmatprep.mubr.f32.mxu1 %v545_v3 }
  0x3e   :  { %507 = vmatmul.mubr.msk.f32.gmra.mxu0 %vm74_vm0, %v25_v39  ;;  %523 = vmatmul.mubr.msk.f32.gmra.mxu1 %vm74_vm0, %v41_v40 }
  0x3f   :  { %307 = vmatprep.mubr.f32.mxu0 %v545_v3  ;;  %403 = vmatprep.mubr.f32.mxu1 %v545_v3 }
  0x42   :  { %508 = vmatmul.mubr.msk.f32.gmra.mxu0 %vm74_vm0, %v26_v41  ;;  %524 = vmatmul.mubr.msk.f32.gmra.mxu1 %vm74_vm0, %v42_v42 }
  0x43   :  { %313 = vmatprep.mubr.f32.mxu0 %v545_v3  ;;  %409 = vmatprep.mubr.f32.mxu1 %v545_v3 }
  0x46   :  { %509 = vmatmul.mubr.msk.f32.gmra.mxu0 %vm74_vm0, %v27_v43  ;;  %525 = vmatmul.mubr.msk.f32.gmra.mxu1 %vm74_vm0, %v43_v44 }
  0x47   :  { %319 = vmatprep.mubr.f32.mxu0 %v545_v3  ;;  %415 = vmatprep.mubr.f32.mxu1 %v545_v3 }
  0x4a   :  { %510 = vmatmul.mubr.msk.f32.gmra.mxu0 %vm74_vm0, %v28_v45  ;;  %526 = vmatmul.mubr.msk.f32.gmra.mxu1 %vm74_vm0, %v44_v46 }
  0x4b   :  { %325 = vmatprep.mubr.f32.mxu0 %v545_v3  ;;  %421 = vmatprep.mubr.f32.mxu1 %v545_v3 }
  0x4e   :  { %511 = vmatmul.mubr.msk.f32.gmra.mxu0 %vm74_vm0, %v29_v47  ;;  %527 = vmatmul.mubr.msk.f32.gmra.mxu1 %vm74_vm0, %v45_v48 }
  0xd2   :  { %v237_v56 = vpop.f32.mrf.mxu0  ;;  %v333_v57 = vpop.f32.mrf.mxu1 }
  0xd3   :  { %v238_v58 = vadd.f32 %v237_v56, %v777_v54  ;;  %v334_v59 = vadd.f32 %v333_v57, %v777_v54 }
  0xd4   :  { %v239_v60 = vpop.f32.mrf.mxu0  ;;  %v335_v61 = vpop.f32.mrf.mxu1 }
  0xd5   :  { %428 = vst [vmem:[%s1072_s3] sm:$0xff] %v238_v58  ;;  %460 = vst [vmem:[%s1072_s3 + $0x100] sm:$0xff] %v334_v59  ;;  %v240_v62 = vadd.f32 %v239_v60, %v779_v55  ;;  %v336_v63 = vadd.f32 %v335_v61, %v779_v55 }
  0xd6   :  { %v243_v0 = vpop.f32.mrf.mxu0  ;;  %v339_v1 = vpop.f32.mrf.mxu1 }
  0xd7   :  { %429 = vst.msk [vmem:[%s1072_s3 + $0x8] sm:$0xff] %vm74_vm0, %v240_v62  ;;  %461 = vst.msk [vmem:[%s1072_s3 + $0x108] sm:$0xff] %vm74_vm0, %v336_v63  ;;  %v244_v2 = vadd.f32 %v243_v0, %v777_v54  ;;  %v340_v3 = vadd.f32 %v339_v1, %v777_v54 }
  0xd8   :  { %v245_v4 = vpop.f32.mrf.mxu0  ;;  %v341_v5 = vpop.f32.mrf.mxu1 }
  0xd9   :  { %430 = vst [vmem:[%s1072_s3 + $0x10] sm:$0xff] %v244_v2  ;;  %462 = vst [vmem:[%s1072_s3 + $0x110] sm:$0xff] %v340_v3  ;;  %v246_v6 = vadd.f32 %v245_v4, %v779_v55  ;;  %v342_v7 = vadd.f32 %v341_v5, %v779_v55 }
  0xda   :  { %v249_v8 = vpop.f32.mrf.mxu0  ;;  %v345_v9 = vpop.f32.mrf.mxu1 }
  0xdb   :  { %431 = vst.msk [vmem:[%s1072_s3 + $0x18] sm:$0xff] %vm74_vm0, %v246_v6  ;;  %463 = vst.msk [vmem:[%s1072_s3 + $0x118] sm:$0xff] %vm74_vm0, %v342_v7  ;;  %v250_v10 = vadd.f32 %v249_v8, %v777_v54  ;;  %v346_v11 = vadd.f32 %v345_v9, %v777_v54 }
  0xdc   :  { %v251_v12 = vpop.f32.mrf.mxu0  ;;  %v347_v13 = vpop.f32.mrf.mxu1 }
  0xdd   :  { %432 = vst [vmem:[%s1072_s3 + $0x20] sm:$0xff] %v250_v10  ;;  %464 = vst [vmem:[%s1072_s3 + $0x120] sm:$0xff] %v346_v11  ;;  %v252_v14 = vadd.f32 %v251_v12, %v779_v55  ;;  %v348_v15 = vadd.f32 %v347_v13, %v779_v55 }
  0xde   :  { %v255_v16 = vpop.f32.mrf.mxu0  ;;  %v351_v17 = vpop.f32.mrf.mxu1 }
  0xdf   :  { %433 = vst.msk [vmem:[%s1072_s3 + $0x28] sm:$0xff] %vm74_vm0, %v252_v14  ;;  %465 = vst.msk [vmem:[%s1072_s3 + $0x128] sm:$0xff] %vm74_vm0, %v348_v15  ;;  %v256_v18 = vadd.f32 %v255_v16, %v777_v54  ;;  %v352_v19 = vadd.f32 %v351_v17, %v777_v54 }
  0xe0   :  { %v257_v20 = vpop.f32.mrf.mxu0  ;;  %v353_v21 = vpop.f32.mrf.mxu1 }
  0xe1   :  { %434 = vst [vmem:[%s1072_s3 + $0x30] sm:$0xff] %v256_v18  ;;  %466 = vst [vmem:[%s1072_s3 + $0x130] sm:$0xff] %v352_v19  ;;  %v258_v22 = vadd.f32 %v257_v20, %v779_v55  ;;  %v354_v23 = vadd.f32 %v353_v21, %v779_v55 }
  0xe2   :  { %v261_v24 = vpop.f32.mrf.mxu0  ;;  %v357_v25 = vpop.f32.mrf.mxu1 }
  0xe3   :  { %435 = vst.msk [vmem:[%s1072_s3 + $0x38] sm:$0xff] %vm74_vm0, %v258_v22  ;;  %467 = vst.msk [vmem:[%s1072_s3 + $0x138] sm:$0xff] %vm74_vm0, %v354_v23  ;;  %v262_v26 = vadd.f32 %v261_v24, %v777_v54  ;;  %v358_v27 = vadd.f32 %v357_v25, %v777_v54 }
  0xe4   :  { %v263_v28 = vpop.f32.mrf.mxu0  ;;  %v359_v29 = vpop.f32.mrf.mxu1 }
  0xe5   :  { %436 = vst [vmem:[%s1072_s3 + $0x40] sm:$0xff] %v262_v26  ;;  %468 = vst [vmem:[%s1072_s3 + $0x140] sm:$0xff] %v358_v27  ;;  %v264_v30 = vadd.f32 %v263_v28, %v779_v55  ;;  %v360_v31 = vadd.f32 %v359_v29, %v779_v55 }
  0xe6   :  { %v267_v32 = vpop.f32.mrf.mxu0  ;;  %v363_v33 = vpop.f32.mrf.mxu1 }
  0xe7   :  { %437 = vst.msk [vmem:[%s1072_s3 + $0x48] sm:$0xff] %vm74_vm0, %v264_v30  ;;  %469 = vst.msk [vmem:[%s1072_s3 + $0x148] sm:$0xff] %vm74_vm0, %v360_v31  ;;  %v268_v34 = vadd.f32 %v267_v32, %v777_v54  ;;  %v364_v35 = vadd.f32 %v363_v33, %v777_v54 }
  0xe8   :  { %v269_v36 = vpop.f32.mrf.mxu0  ;;  %v365_v37 = vpop.f32.mrf.mxu1 }
  0xe9   :  { %438 = vst [vmem:[%s1072_s3 + $0x50] sm:$0xff] %v268_v34  ;;  %470 = vst [vmem:[%s1072_s3 + $0x150] sm:$0xff] %v364_v35  ;;  %v270_v38 = vadd.f32 %v269_v36, %v779_v55  ;;  %v366_v39 = vadd.f32 %v365_v37, %v779_v55 }
  0xea   :  { %v273_v40 = vpop.f32.mrf.mxu0  ;;  %v369_v41 = vpop.f32.mrf.mxu1 }
  0xeb   :  { %439 = vst.msk [vmem:[%s1072_s3 + $0x58] sm:$0xff] %vm74_vm0, %v270_v38  ;;  %471 = vst.msk [vmem:[%s1072_s3 + $0x158] sm:$0xff] %vm74_vm0, %v366_v39  ;;  %v274_v42 = vadd.f32 %v273_v40, %v777_v54  ;;  %v370_v43 = vadd.f32 %v369_v41, %v777_v54 }
  0xec   :  { %v275_v44 = vpop.f32.mrf.mxu0  ;;  %v371_v45 = vpop.f32.mrf.mxu1 }
  0xed   :  { %440 = vst [vmem:[%s1072_s3 + $0x60] sm:$0xff] %v274_v42  ;;  %472 = vst [vmem:[%s1072_s3 + $0x160] sm:$0xff] %v370_v43  ;;  %v276_v46 = vadd.f32 %v275_v44, %v779_v55  ;;  %v372_v47 = vadd.f32 %v371_v45, %v779_v55 }
  0xee   :  { %v279_v48 = vpop.f32.mrf.mxu0  ;;  %v375_v49 = vpop.f32.mrf.mxu1 }
  0xef   :  { %441 = vst.msk [vmem:[%s1072_s3 + $0x68] sm:$0xff] %vm74_vm0, %v276_v46  ;;  %473 = vst.msk [vmem:[%s1072_s3 + $0x168] sm:$0xff] %vm74_vm0, %v372_v47  ;;  %v280_v50 = vadd.f32 %v279_v48, %v777_v54  ;;  %v376_v51 = vadd.f32 %v375_v49, %v777_v54 }
  0xf0   :  { %v281_v52 = vpop.f32.mrf.mxu0  ;;  %v377_v53 = vpop.f32.mrf.mxu1 }
  0xf1   :  { %442 = vst [vmem:[%s1072_s3 + $0x70] sm:$0xff] %v280_v50  ;;  %474 = vst [vmem:[%s1072_s3 + $0x170] sm:$0xff] %v376_v51  ;;  %v282_v56 = vadd.f32 %v281_v52, %v779_v55  ;;  %v378_v57 = vadd.f32 %v377_v53, %v779_v55 }
  0xf2   :  { %v285_v58 = vpop.f32.mrf.mxu0  ;;  %v381_v59 = vpop.f32.mrf.mxu1 }
  0xf3   :  { %443 = vst.msk [vmem:[%s1072_s3 + $0x78] sm:$0xff] %vm74_vm0, %v282_v56  ;;  %475 = vst.msk [vmem:[%s1072_s3 + $0x178] sm:$0xff] %vm74_vm0, %v378_v57  ;;  %v286_v60 = vadd.f32 %v285_v58, %v777_v54  ;;  %v382_v61 = vadd.f32 %v381_v59, %v777_v54 }
  0xf4   :  { %v287_v62 = vpop.f32.mrf.mxu0  ;;  %v383_v63 = vpop.f32.mrf.mxu1 }
  0xf5   :  { %444 = vst [vmem:[%s1072_s3 + $0x80] sm:$0xff] %v286_v60  ;;  %476 = vst [vmem:[%s1072_s3 + $0x180] sm:$0xff] %v382_v61  ;;  %v288_v0 = vadd.f32 %v287_v62, %v779_v55  ;;  %v384_v1 = vadd.f32 %v383_v63, %v779_v55 }
  0xf6   :  { %v291_v2 = vpop.f32.mrf.mxu0  ;;  %v387_v3 = vpop.f32.mrf.mxu1 }
  0xf7   :  { %445 = vst.msk [vmem:[%s1072_s3 + $0x88] sm:$0xff] %vm74_vm0, %v288_v0  ;;  %477 = vst.msk [vmem:[%s1072_s3 + $0x188] sm:$0xff] %vm74_vm0, %v384_v1  ;;  %v292_v4 = vadd.f32 %v291_v2, %v777_v54  ;;  %v388_v5 = vadd.f32 %v387_v3, %v777_v54 }
  0xf8   :  { %v293_v6 = vpop.f32.mrf.mxu0  ;;  %v389_v7 = vpop.f32.mrf.mxu1 }
  0xf9   :  { %446 = vst [vmem:[%s1072_s3 + $0x90] sm:$0xff] %v292_v4  ;;  %478 = vst [vmem:[%s1072_s3 + $0x190] sm:$0xff] %v388_v5  ;;  %v294_v8 = vadd.f32 %v293_v6, %v779_v55  ;;  %v390_v9 = vadd.f32 %v389_v7, %v779_v55 }
  0xfa   :  { %v297_v10 = vpop.f32.mrf.mxu0  ;;  %v393_v11 = vpop.f32.mrf.mxu1 }
  0xfb   :  { %447 = vst.msk [vmem:[%s1072_s3 + $0x98] sm:$0xff] %vm74_vm0, %v294_v8  ;;  %479 = vst.msk [vmem:[%s1072_s3 + $0x198] sm:$0xff] %vm74_vm0, %v390_v9  ;;  %v298_v12 = vadd.f32 %v297_v10, %v777_v54  ;;  %v394_v13 = vadd.f32 %v393_v11, %v777_v54 }
  0xfc   :  { %v299_v14 = vpop.f32.mrf.mxu0  ;;  %v395_v15 = vpop.f32.mrf.mxu1 }
  0xfd   :  { %448 = vst [vmem:[%s1072_s3 + $0xa0] sm:$0xff] %v298_v12  ;;  %480 = vst [vmem:[%s1072_s3 + $0x1a0] sm:$0xff] %v394_v13  ;;  %v300_v16 = vadd.f32 %v299_v14, %v779_v55  ;;  %v396_v17 = vadd.f32 %v395_v15, %v779_v55 }
  0xfe   :  { %v303_v18 = vpop.f32.mrf.mxu0  ;;  %v399_v19 = vpop.f32.mrf.mxu1 }
  0xff   :  { %449 = vst.msk [vmem:[%s1072_s3 + $0xa8] sm:$0xff] %vm74_vm0, %v300_v16  ;;  %481 = vst.msk [vmem:[%s1072_s3 + $0x1a8] sm:$0xff] %vm74_vm0, %v396_v17  ;;  %v304_v20 = vadd.f32 %v303_v18, %v777_v54  ;;  %v400_v21 = vadd.f32 %v399_v19, %v777_v54 }
 0x100   :  { %v305_v22 = vpop.f32.mrf.mxu0  ;;  %v401_v23 = vpop.f32.mrf.mxu1 }
 0x101   :  { %450 = vst [vmem:[%s1072_s3 + $0xb0] sm:$0xff] %v304_v20  ;;  %482 = vst [vmem:[%s1072_s3 + $0x1b0] sm:$0xff] %v400_v21  ;;  %v306_v24 = vadd.f32 %v305_v22, %v779_v55  ;;  %v402_v25 = vadd.f32 %v401_v23, %v779_v55 }
 0x102   :  { %v309_v26 = vpop.f32.mrf.mxu0  ;;  %v405_v27 = vpop.f32.mrf.mxu1 }
 0x103   :  { %451 = vst.msk [vmem:[%s1072_s3 + $0xb8] sm:$0xff] %vm74_vm0, %v306_v24  ;;  %483 = vst.msk [vmem:[%s1072_s3 + $0x1b8] sm:$0xff] %vm74_vm0, %v402_v25  ;;  %v310_v28 = vadd.f32 %v309_v26, %v777_v54  ;;  %v406_v29 = vadd.f32 %v405_v27, %v777_v54 }
 0x104   :  { %v311_v30 = vpop.f32.mrf.mxu0  ;;  %v407_v31 = vpop.f32.mrf.mxu1 }
 0x105   :  { %452 = vst [vmem:[%s1072_s3 + $0xc0] sm:$0xff] %v310_v28  ;;  %484 = vst [vmem:[%s1072_s3 + $0x1c0] sm:$0xff] %v406_v29  ;;  %v312_v32 = vadd.f32 %v311_v30, %v779_v55  ;;  %v408_v33 = vadd.f32 %v407_v31, %v779_v55 }
 0x106   :  { %v315_v34 = vpop.f32.mrf.mxu0  ;;  %v411_v35 = vpop.f32.mrf.mxu1 }
 0x107   :  { %453 = vst.msk [vmem:[%s1072_s3 + $0xc8] sm:$0xff] %vm74_vm0, %v312_v32  ;;  %485 = vst.msk [vmem:[%s1072_s3 + $0x1c8] sm:$0xff] %vm74_vm0, %v408_v33  ;;  %v316_v36 = vadd.f32 %v315_v34, %v777_v54  ;;  %v412_v37 = vadd.f32 %v411_v35, %v777_v54 }
 0x108   :  { %v317_v38 = vpop.f32.mrf.mxu0  ;;  %v413_v39 = vpop.f32.mrf.mxu1 }
 0x109   :  { %454 = vst [vmem:[%s1072_s3 + $0xd0] sm:$0xff] %v316_v36  ;;  %486 = vst [vmem:[%s1072_s3 + $0x1d0] sm:$0xff] %v412_v37  ;;  %v318_v40 = vadd.f32 %v317_v38, %v779_v55  ;;  %v414_v41 = vadd.f32 %v413_v39, %v779_v55 }
 0x10a   :  { %v321_v42 = vpop.f32.mrf.mxu0  ;;  %v417_v43 = vpop.f32.mrf.mxu1 }
 0x10b   :  { %455 = vst.msk [vmem:[%s1072_s3 + $0xd8] sm:$0xff] %vm74_vm0, %v318_v40  ;;  %487 = vst.msk [vmem:[%s1072_s3 + $0x1d8] sm:$0xff] %vm74_vm0, %v414_v41  ;;  %v322_v44 = vadd.f32 %v321_v42, %v777_v54  ;;  %v418_v45 = vadd.f32 %v417_v43, %v777_v54 }
 0x10c   :  { %v323_v46 = vpop.f32.mrf.mxu0  ;;  %v419_v47 = vpop.f32.mrf.mxu1 }
 0x10d   :  { %456 = vst [vmem:[%s1072_s3 + $0xe0] sm:$0xff] %v322_v44  ;;  %488 = vst [vmem:[%s1072_s3 + $0x1e0] sm:$0xff] %v418_v45  ;;  %v324_v48 = vadd.f32 %v323_v46, %v779_v55  ;;  %v420_v49 = vadd.f32 %v419_v47, %v779_v55 }
 0x10e   :  { %v327_v50 = vpop.f32.mrf.mxu0  ;;  %v423_v51 = vpop.f32.mrf.mxu1 }
 0x10f   :  { %457 = vst.msk [vmem:[%s1072_s3 + $0xe8] sm:$0xff] %vm74_vm0, %v324_v48  ;;  %489 = vst.msk [vmem:[%s1072_s3 + $0x1e8] sm:$0xff] %vm74_vm0, %v420_v49  ;;  %v328_v52 = vadd.f32 %v327_v50, %v777_v54  ;;  %v424_v53 = vadd.f32 %v423_v51, %v777_v54 }
 0x110   :  { %v329_v56 = vpop.f32.mrf.mxu0  ;;  %v425_v57 = vpop.f32.mrf.mxu1 }
 0x111   :  { %458 = vst [vmem:[%s1072_s3 + $0xf0] sm:$0xff] %v328_v52  ;;  %490 = vst [vmem:[%s1072_s3 + $0x1f0] sm:$0xff] %v424_v53  ;;  %v330_v58 = vadd.f32 %v329_v56, %v779_v55  ;;  %v426_v59 = vadd.f32 %v425_v57, %v779_v55 }
 0x113   :  { %459 = vst.msk [vmem:[%s1072_s3 + $0xf8] sm:$0xff] %vm74_vm0, %v330_v58  ;;  %491 = vst.msk [vmem:[%s1072_s3 + $0x1f8] sm:$0xff] %vm74_vm0, %v426_v59 }

</bundles_post_ra>
